<compile_context>
chip_gen: v7x
topology: tpu7x:2x2x1
jax: 0.10.0
libtpu: 0.0.40
codegen_flags: <defaults>
</compile_context>

<pallas_src>
import jax
import jax.numpy as jnp
from jax import lax
from jax.experimental import pallas as pl
from jax.experimental.pallas import tpu as pltpu


# ---------------------------------------------------------------------------
# Fused kernel
#   grid = (B, L // TL)
#   refs: ids_row (1,1,TL) i32, ids_col (1,TL,1) i32,
#         table (Vp,H) bf16, w (H,H) bf16, bias (1,H) f32
#   out : (1,1,H) f32
#   scratch: acc (1,H) f32, den (1,1) f32
# ---------------------------------------------------------------------------
def fused_encoder_pool_kernel(ids_row_ref, ids_col_ref, table_ref, w_ref, b_ref,
                              o_ref, acc_ref, den_ref):
    li = pl.program_id(1)

    @pl.when(li == 0)
    def _init():
        acc_ref[...] = jnp.zeros_like(acc_ref)
        den_ref[...] = jnp.zeros_like(den_ref)

    ids_row = ids_row_ref[0]                       # (1, TL)  int32
    ids_col = ids_col_ref[0]                       # (TL, 1)  int32
    tl = ids_col.shape[0]
    vocab = table_ref.shape[0]

    # attention mask: input_ids != 1 (RoBERTa pad id), computed in-kernel
    mask_row = (ids_row != 1).astype(jnp.float32)  # (1, TL)

    # --- embedding lookup as a one-hot matmul on the MXU --------------------
    vocab_iota = lax.broadcasted_iota(jnp.int32, (tl, vocab), 1)
    onehot = (ids_col == vocab_iota).astype(jnp.bfloat16)          # (TL, Vp)
    emb = jnp.dot(onehot, table_ref[...],
                  preferred_element_type=jnp.float32)              # (TL, H) f32

    # --- synthetic encoder layer: dense + tanh (bf16 MXU, f32 accumulate) ---
    h = jnp.tanh(jnp.dot(emb.astype(jnp.bfloat16), w_ref[...],
                         preferred_element_type=jnp.float32)
                 + b_ref[...])                                     # (TL, H) f32

    # --- masked pooling as an MXU contraction (mask folded into the dot) ----
    acc_ref[...] += jnp.dot(mask_row, h,
                            preferred_element_type=jnp.float32)    # (1, H)
    den_ref[...] += jnp.sum(mask_row, axis=1, keepdims=True)       # (1, 1)

    # --- epilogue: mean + L2 normalize (F.normalize p=2 dim=1) --------------
    @pl.when(li == pl.num_programs(1) - 1)
    def _finalize():
        inv_den = pl.reciprocal(den_ref[...], approx=True)         # EUP
        pooled = acc_ref[...] * inv_den                            # (1, H)
        sq = jnp.sum(pooled * pooled, axis=1, keepdims=True)       # (1, 1)
        # 1 / max(||pooled||, 1e-12)  ==  rsqrt(max(sq, 1e-24))
        inv_norm = lax.rsqrt(jnp.maximum(sq, 1e-24))               # EUP
        o_ref[...] = (pooled * inv_norm).reshape(o_ref.shape)


# ---------------------------------------------------------------------------
# Wrapper
# ---------------------------------------------------------------------------
def model_forward(input_ids, emb_table, w, b, *, seq_tile=None):
    """Mirror of Model.forward (encoder replaced by synthetic embed+dense)."""
    B, L = input_ids.shape
    V, H = emb_table.shape
    assert H % 128 == 0, "hidden size must be lane-dense (multiple of 128)"

    # Sequence tile: multiple of 128 (or the full L for short sequences).
    # For realistic encoder sizes pick TL so that the (TL, H) bf16 tiles plus
    # the resident (H, H) weight stay well under the v7x 64 MiB VMEM budget.
    if seq_tile is None:
        seq_tile = 512 if (L > 512 and L % 512 == 0) else L
    TL = seq_tile
    assert L % TL == 0 and (TL == L or TL % 128 == 0)
    NL = L // TL

    # Pad vocab to a lane multiple so the one-hot contraction is MXU-aligned.
    Vp = ((V + 127) // 128) * 128
    table_bf = emb_table.astype(jnp.bfloat16)
    if Vp != V:
        table_bf = jnp.pad(table_bf, ((0, Vp - V), (0, 0)))

    ids = input_ids.astype(jnp.int32)
    ids_row = ids.reshape(B, 1, L)        # mask layout   (lanes = seq)
    ids_col = ids.reshape(B, L, 1)        # one-hot layout (sublanes = seq)
    w_bf = w.astype(jnp.bfloat16)
    b_f32 = b.astype(jnp.float32).reshape(1, H)

    out3 = pl.pallas_call(
        fused_encoder_pool_kernel,
        out_shape=jax.ShapeDtypeStruct((B, 1, H), jnp.float32),
        grid_spec=pltpu.PrefetchScalarGridSpec(
            num_scalar_prefetch=0,
            grid=(B, NL),
            in_specs=[
                pl.BlockSpec((1, 1, TL), lambda bi, li: (bi, 0, li)),   # ids_row
                pl.BlockSpec((1, TL, 1), lambda bi, li: (bi, li, 0)),   # ids_col
                pl.BlockSpec((Vp, H), lambda bi, li: (0, 0)),           # emb table
                pl.BlockSpec((H, H), lambda bi, li: (0, 0)),            # dense W
                pl.BlockSpec((1, H), lambda bi, li: (0, 0)),            # dense b
            ],
            out_specs=pl.BlockSpec((1, 1, H), lambda bi, li: (bi, 0, 0)),
            scratch_shapes=[
                pltpu.VMEM((1, H), jnp.float32),   # pooled-sum accumulator
                pltpu.VMEM((1, 1), jnp.float32),   # mask-count accumulator
            ],
        ),
        compiler_params=pltpu.CompilerParams(
            dimension_semantics=("parallel", "arbitrary")),
    )(ids_row, ids_col, table_bf, w_bf, b_f32)

    return out3.reshape(B, H)


if __name__ == "__main__":
    key = jax.random.PRNGKey(0)
    B, L, H, V = 2, 8, 128, 50

    k1, k2, k3, k4 = jax.random.split(key, 4)
    emb_table = jax.random.normal(k1, (V, H), dtype=jnp.float32) * 0.02
    w = jax.random.normal(k2, (H, H), dtype=jnp.float32) * 0.02
    b = jax.random.normal(k3, (1, H), dtype=jnp.float32) * 0.02

    # input_ids with padding tokens (id == 1 is the pad token, as in RoBERTa)
    input_ids = jax.random.randint(k4, (B, L), 2, V, dtype=jnp.int32)
    input_ids = input_ids.at[0, 6:].set(1)
    input_ids = input_ids.at[1, 4:].set(1)

    out = model_forward(input_ids, emb_table, w, b)
    jax.block_until_ready(out)

    # ---- plain-JAX reference (same bf16 weight rounding as the kernel) ----
    table_ref = emb_table.astype(jnp.bfloat16).astype(jnp.float32)
    w_ref = w.astype(jnp.bfloat16).astype(jnp.float32)
    emb = table_ref[input_ids]                                         # [B,L,H]
    hidden = jnp.tanh(emb.reshape(B * L, H) @ w_ref + b).reshape(B, L, H)
    m = (input_ids != 1).astype(jnp.float32)
    pooled = (hidden * m[:, :, None]).sum(1) / m.sum(-1)[:, None]
    out_ref = pooled / jnp.maximum(
        jnp.linalg.norm(pooled, axis=1, keepdims=True), 1e-12)

    err = jnp.max(jnp.abs(out - out_ref))
    assert jnp.allclose(out, out_ref, atol=2e-3), f"mismatch vs reference: {err}"

    print("KERNEL_OK")
</pallas_src>

<mosaic_0001>
module attributes {stable_mosaic.version = 11 : i64} {
  func.func @fused_encoder_pool_kernel(%arg0: i32, %arg1: i32, %arg2: memref<1x1x8xi32, #tpu.memory_space<vmem>>, %arg3: memref<1x8x1xi32, #tpu.memory_space<vmem>>, %arg4: memref<128x128xbf16, #tpu.memory_space<vmem>>, %arg5: memref<128x128xbf16, #tpu.memory_space<vmem>>, %arg6: memref<1x128xf32, #tpu.memory_space<vmem>>, %arg7: memref<1x1x128xf32, #tpu.memory_space<vmem>>, %arg8: memref<1x128xf32, #tpu.memory_space<vmem>>, %arg9: memref<1x1xf32, #tpu.memory_space<vmem>>) attributes {dimension_semantics = [#tpu.dimension_semantics<parallel>, #tpu.dimension_semantics<arbitrary>], iteration_bounds = array<i64: 2, 1>, scalar_prefetch = 0 : i64, scratch_operands = 2 : i64, tpu.core_type = #tpu.core_type<tc>, window_params = [{transform_indices = @transform_0, window_bounds = array<i64: 1, 1, 8>}, {transform_indices = @transform_1, window_bounds = array<i64: 1, 8, 1>}, {pipeline_mode = #tpu.pipeline_mode<synchronous>, transform_indices = @transform_2, window_bounds = array<i64: 128, 128>}, {pipeline_mode = #tpu.pipeline_mode<synchronous>, transform_indices = @transform_3, window_bounds = array<i64: 128, 128>}, {pipeline_mode = #tpu.pipeline_mode<synchronous>, transform_indices = @transform_4, window_bounds = array<i64: 1, 128>}, {transform_indices = @transform_5, window_bounds = array<i64: 1, 1, 128>}]} {
    %c0_i32 = arith.constant 0 : i32
    %0 = arith.cmpi eq, %arg1, %c0_i32 : i32
    %1 = arith.extui %0 : i1 to i32
    %c0_i32_0 = arith.constant 0 : i32
    %2 = arith.cmpi ne, %1, %c0_i32_0 : i32
    scf.if %2 {
      %cst_25 = arith.constant 0.000000e+00 : f32
      %38 = vector.broadcast %cst_25 : f32 to vector<1x128xf32>
      %c0_26 = arith.constant 0 : index
      %c0_27 = arith.constant 0 : index
      %39 = vector.load %arg8[%c0_26, %c0_27] : memref<1x128xf32, #tpu.memory_space<vmem>>, vector<1x128xf32>
      tpu.vector_store %arg8[%c0_26, %c0_27], %38 {strides = array<i32>} : memref<1x128xf32, #tpu.memory_space<vmem>>, vector<1x128xf32>,
      %cst_28 = arith.constant 0.000000e+00 : f32
      %40 = vector.broadcast %cst_28 : f32 to vector<1x1xf32>
      %c0_29 = arith.constant 0 : index
      %c0_30 = arith.constant 0 : index
      %41 = vector.load %arg9[%c0_29, %c0_30] : memref<1x1xf32, #tpu.memory_space<vmem>>, vector<1x1xf32>
      tpu.vector_store %arg9[%c0_29, %c0_30], %40 {strides = array<i32>} : memref<1x1xf32, #tpu.memory_space<vmem>>, vector<1x1xf32>,
    } else {
    }
    %c0 = arith.constant 0 : index
    %c0_1 = arith.constant 0 : index
    %c0_2 = arith.constant 0 : index
    %3 = vector.load %arg2[%c0, %c0_1, %c0_2] : memref<1x1x8xi32, #tpu.memory_space<vmem>>, vector<1x1x8xi32>
    %4 = vector.shape_cast %3 : vector<1x1x8xi32> to vector<1x8xi32>
    %c0_3 = arith.constant 0 : index
    %c0_4 = arith.constant 0 : index
    %c0_5 = arith.constant 0 : index
    %5 = vector.load %arg3[%c0_3, %c0_4, %c0_5] : memref<1x8x1xi32, #tpu.memory_space<vmem>>, vector<1x8x1xi32>
    %6 = vector.shape_cast %5 : vector<1x8x1xi32> to vector<8x1xi32>
    %c1_i32 = arith.constant 1 : i32
    %7 = vector.broadcast %c1_i32 : i32 to vector<1x8xi32>
    %8 = arith.cmpi ne, %4, %7 : vector<1x8xi32>
    %9 = arith.extui %8 : vector<1x8xi1> to vector<1x8xi32>
    %10 = arith.sitofp %9 : vector<1x8xi32> to vector<1x8xf32>
    %11 = tpu.iota {dimensions = array<i32: 1>} : vector<8x128xi32>
    %12 = vector.broadcast %6 : vector<8x1xi32> to vector<8x128xi32>
    %13 = arith.cmpi eq, %12, %11 : vector<8x128xi32>
    %14 = arith.extui %13 : vector<8x128xi1> to vector<8x128xi32>
    %15 = arith.sitofp %14 : vector<8x128xi32> to vector<8x128xf32>
    %16 = arith.truncf %15 : vector<8x128xf32> to vector<8x128xbf16>
    %c0_6 = arith.constant 0 : index
    %c0_7 = arith.constant 0 : index
    %17 = vector.load %arg4[%c0_6, %c0_7] : memref<128x128xbf16, #tpu.memory_space<vmem>>, vector<128x128xbf16>
    %cst = arith.constant dense<0.000000e+00> : vector<8x128xf32>
    %18 = tpu.matmul %16, %17, %cst {dimension_numbers = #tpu.dot_dimension_numbers<[1], [0], [0], [1], [0, 0, 1, 1], [], []>} : vector<8x128xbf16>, vector<128x128xbf16>, vector<8x128xf32> -> vector<8x128xf32>
    %19 = arith.truncf %18 : vector<8x128xf32> to vector<8x128xbf16>
    %c0_8 = arith.constant 0 : index
    %c0_9 = arith.constant 0 : index
    %20 = vector.load %arg5[%c0_8, %c0_9] : memref<128x128xbf16, #tpu.memory_space<vmem>>, vector<128x128xbf16>
    %cst_10 = arith.constant dense<0.000000e+00> : vector<8x128xf32>
    %21 = tpu.matmul %19, %20, %cst_10 {dimension_numbers = #tpu.dot_dimension_numbers<[1], [0], [0], [1], [0, 0, 1, 1], [], []>} : vector<8x128xbf16>, vector<128x128xbf16>, vector<8x128xf32> -> vector<8x128xf32>
    %c0_11 = arith.constant 0 : index
    %c0_12 = arith.constant 0 : index
    %22 = vector.load %arg6[%c0_11, %c0_12] : memref<1x128xf32, #tpu.memory_space<vmem>>, vector<1x128xf32>
    %23 = vector.broadcast %22 : vector<1x128xf32> to vector<8x128xf32>
    %24 = arith.addf %21, %23 : vector<8x128xf32>
    %25 = math.tanh %24 : vector<8x128xf32>
    %c0_13 = arith.constant 0 : index
    %c0_14 = arith.constant 0 : index
    %26 = vector.load %arg8[%c0_13, %c0_14] : memref<1x128xf32, #tpu.memory_space<vmem>>, vector<1x128xf32>
    %cst_15 = arith.constant dense<0.000000e+00> : vector<1x128xf32>
    %27 = tpu.matmul %10, %25, %cst_15 {dimension_numbers = #tpu.dot_dimension_numbers<[1], [0], [0], [1], [0, 0, 1, 1], [], []>} : vector<1x8xf32>, vector<8x128xf32>, vector<1x128xf32> -> vector<1x128xf32>
    %28 = arith.addf %26, %27 : vector<1x128xf32>
    %c0_16 = arith.constant 0 : index
    %c0_17 = arith.constant 0 : index
    %29 = vector.load %arg8[%c0_16, %c0_17] : memref<1x128xf32, #tpu.memory_space<vmem>>, vector<1x128xf32>
    tpu.vector_store %arg8[%c0_16, %c0_17], %28 {strides = array<i32>} : memref<1x128xf32, #tpu.memory_space<vmem>>, vector<1x128xf32>,
    %c0_18 = arith.constant 0 : index
    %c0_19 = arith.constant 0 : index
    %30 = vector.load %arg9[%c0_18, %c0_19] : memref<1x1xf32, #tpu.memory_space<vmem>>, vector<1x1xf32>
    %cst_20 = arith.constant dense<0.000000e+00> : vector<1xf32>
    %31 = vector.multi_reduction <add>, %10, %cst_20 [1] : vector<1x8xf32> to vector<1xf32>
    %32 = vector.shape_cast %31 : vector<1xf32> to vector<1x1xf32>
    %33 = arith.addf %30, %32 : vector<1x1xf32>
    %c0_21 = arith.constant 0 : index
    %c0_22 = arith.constant 0 : index
    %34 = vector.load %arg9[%c0_21, %c0_22] : memref<1x1xf32, #tpu.memory_space<vmem>>, vector<1x1xf32>
    tpu.vector_store %arg9[%c0_21, %c0_22], %33 {strides = array<i32>} : memref<1x1xf32, #tpu.memory_space<vmem>>, vector<1x1xf32>,
    %c0_i32_23 = arith.constant 0 : i32
    %35 = arith.cmpi eq, %arg1, %c0_i32_23 : i32
    %36 = arith.extui %35 : i1 to i32
    %c0_i32_24 = arith.constant 0 : i32
    %37 = arith.cmpi ne, %36, %c0_i32_24 : i32
    scf.if %37 {
      %c0_25 = arith.constant 0 : index
      %c0_26 = arith.constant 0 : index
      %38 = vector.load %arg9[%c0_25, %c0_26] : memref<1x1xf32, #tpu.memory_space<vmem>>, vector<1x1xf32>
      %39 = tpu.reciprocal %38 {approx = true} : vector<1x1xf32> -> vector<1x1xf32>
      %c0_27 = arith.constant 0 : index
      %c0_28 = arith.constant 0 : index
      %40 = vector.load %arg8[%c0_27, %c0_28] : memref<1x128xf32, #tpu.memory_space<vmem>>, vector<1x128xf32>
      %41 = vector.broadcast %39 : vector<1x1xf32> to vector<1x128xf32>
      %42 = arith.mulf %40, %41 : vector<1x128xf32>
      %43 = arith.mulf %42, %42 : vector<1x128xf32>
      %cst_29 = arith.constant dense<0.000000e+00> : vector<1xf32>
      %44 = vector.multi_reduction <add>, %43, %cst_29 [1] : vector<1x128xf32> to vector<1xf32>
      %45 = vector.shape_cast %44 : vector<1xf32> to vector<1x1xf32>
      %cst_30 = arith.constant 1.000000e-24 : f32
      %46 = vector.broadcast %cst_30 : f32 to vector<1x1xf32>
      %47 = arith.maximumf %45, %46 : vector<1x1xf32>
      %48 = math.rsqrt %47 : vector<1x1xf32>
      %49 = vector.broadcast %48 : vector<1x1xf32> to vector<1x128xf32>
      %50 = arith.mulf %42, %49 : vector<1x128xf32>
      %51 = vector.shape_cast %50 : vector<1x128xf32> to vector<1x1x128xf32>
      %c0_31 = arith.constant 0 : index
      %c0_32 = arith.constant 0 : index
      %c0_33 = arith.constant 0 : index
      %52 = vector.load %arg7[%c0_31, %c0_32, %c0_33] : memref<1x1x128xf32, #tpu.memory_space<vmem>>, vector<1x1x128xf32>
      tpu.vector_store %arg7[%c0_31, %c0_32, %c0_33], %51 {strides = array<i32>} : memref<1x1x128xf32, #tpu.memory_space<vmem>>, vector<1x1x128xf32>,
    } else {
    }
    return
  }
  func.func @transform_0(%arg0: i32, %arg1: i32) -> (i32, i32, i32) {
    %c0_i32 = arith.constant 0 : i32
    %c0_i32_0 = arith.constant 0 : i32
    return %arg0, %c0_i32, %arg1 : i32, i32, i32
  }
  func.func @transform_1(%arg0: i32, %arg1: i32) -> (i32, i32, i32) {
    %c0_i32 = arith.constant 0 : i32
    %c0_i32_0 = arith.constant 0 : i32
    return %arg0, %arg1, %c0_i32 : i32, i32, i32
  }
  func.func @transform_2(%arg0: i32, %arg1: i32) -> (i32, i32) {
    %c0_i32 = arith.constant 0 : i32
    %c0_i32_0 = arith.constant 0 : i32
    %c0_i32_1 = arith.constant 0 : i32
    return %c0_i32, %c0_i32_0 : i32, i32
  }
  func.func @transform_3(%arg0: i32, %arg1: i32) -> (i32, i32) {
    %c0_i32 = arith.constant 0 : i32
    %c0_i32_0 = arith.constant 0 : i32
    %c0_i32_1 = arith.constant 0 : i32
    return %c0_i32, %c0_i32_0 : i32, i32
  }
  func.func @transform_4(%arg0: i32, %arg1: i32) -> (i32, i32) {
    %c0_i32 = arith.constant 0 : i32
    %c0_i32_0 = arith.constant 0 : i32
    %c0_i32_1 = arith.constant 0 : i32
    return %c0_i32, %c0_i32_0 : i32, i32
  }
  func.func @transform_5(%arg0: i32, %arg1: i32) -> (i32, i32, i32) {
    %c0_i32 = arith.constant 0 : i32
    %c0_i32_0 = arith.constant 0 : i32
    %c0_i32_1 = arith.constant 0 : i32
    return %arg0, %c0_i32, %c0_i32_0 : i32, i32, i32
  }
}

</mosaic_0001>

<bundles_post_ra>
// kernel: tpu_custom_call.1
= control target key start
LH: loop header
LB: loop body
LE: loop exit
PB: predicated region body
PF: predicated region fallthrough
CT: control target
= control target key end

     0   :  { %10 = vsyncpa [#allocation5], 0  ;;  %s1371_s0 = inlined_call_operand.vmem [shape: s32[2,1,8], index: 0, kind: input, shape index: {}]   ;;  %s1372_s1 = inlined_call_operand.vmem [shape: s32[2,8,1], index: 1, kind: input, shape index: {}]   ;;  %s1373_s2 = inlined_call_operand.hbm [shape: bf16[128,128], index: 2, kind: input, shape index: {}]   ;;  %s1374_s3 = inlined_call_operand.hbm [shape: bf16[128,128], index: 3, kind: input, shape index: {}]   ;;  %s1375_s4 = inlined_call_operand.vmem [shape: f32[1,128], index: 4, kind: input, shape index: {}]   ;;  %s1376_s5 = inlined_call_operand.hbm [shape: f32[2,1,128], index: 5, kind: output, shape index: {}]  }
   0x1   :  { %11 = vsyncpa [#allocation8], 0 }
   0x2   :  { %12 = vsyncpa [#allocation6], 0 }
   0x3   :  { %14 = vsyncpa [#allocation6 + $0x1], 0  ;;  %s1148_s18 = smov 0   ;;  %s1150_s19 = smov 0  }
   0x4   :  { %s1152_s20 = smov 0   ;;  %s1154_s21 = smov 0  }
   0x5   :  { %s1156_s22 = smov 0   ;;  %s1158_s23 = smov 0  }
   0x6 LB: > { %s759_s24 = sadd.s32 4294967295, %s1107_s23   ;;  %s760_s25 = sadd.s32 4294967294, %s1107_s23   ;;  %s1107_s23 = sphi %s1158_s23, %s20_s23   ;;  %s1103_s22 = sphi %s1156_s22, %s1397_s22   ;;  %s1099_s21 = sphi %s1154_s21, %s1396_s21   ;;  %s1095_s20 = sphi %s1152_s20, %s1395_s20   ;;  %s1091_s19 = sphi %s1150_s19, %s1394_s19   ;;  %s1087_s18 = sphi %s1148_s18, %s1393_s18  }
   0x7   : > { %s32_s26 = sadd.s32 1, %s1103_s22  ;;  %s158_s27 = sadd.s32 1, %s1095_s20 }
   0x8   : > { %p34_p0 = scmp.ge.s32.totalorder %s32_s26, 2  ;;  %p168_p1 = scmp.ne.s32.totalorder %s1095_s20, %s1091_s19 }
   0x9   : > { %p169_p2 = scmp.eq.s32.totalorder %s759_s24, 1  ;;  %p174_p3 = scmp.ne.s32.totalorder %s1091_s19, %s1087_s18 }
   0xa   : > { %s1399_s26 = smov (%p34_p0, %s32_s26), 0  ;;  %p175_p5 = scmp.eq.s32.totalorder %s760_s25, 1 }
   0xb   : > { %1382 = sst [smem:[#allocation13_spill]] %s1399_s26  ;;  %p1188_p4 = por %p169_p2, %p168_p1 }
   0xc   : > { %s155_s29 = ssub.s32 %s1103_s22, %s1399_s26  ;;  %p761_p6 = scmp.ge.s32.totalorder %s1107_s23, 1 }
   0xd   : > { %s1383_s28 = scalar_select %p1188_p4, 1, 0 }
   0xe   : > { %p156_p7 = scmp.eq.s32.totalorder %s155_s29, 0  ;;  %p1195_p8 = por %p175_p5, %p174_p3 }
   0xf   : > { %p182_p9 = scmp.lt.s32.totalorder %s1107_s23, 3  ;;  %p1207_p11 = scmp.eq.s32.totalorder %s759_s24, 0 }
  0x10   : > { %s1384_s30 = scalar_select %p1195_p8, 1, 0 }
  0x11   : > { %s1201_s6 = scalar_select %p156_p7, %s1095_s20, %s158_s27  }
  0x12   : > { %p1203_p10 = pnand %p761_p6, %p182_p9  ;;  %s1109_s9 = smov [#allocation4]  }
  0x13   : > { %s1386_s8 = scalar_select %p1207_p11, 1, 0 }
  0x14   : > { %s1385_s7 = scalar_select %p1203_p10, 1, 0 }
  0x15   : > { %p869_p12 = pneg %p1203_p10  ;;  %s194_s10 = sshll.u32 %s1109_s9, 4  ;;  %s195_s10 = int_to_ptr.vmem [resolvable:$true] %s194_s10 }
  0x16   : > { %s1110_s12 = smov [#allocation7]   ;;  %s965_s16 = scalar_lea.hbm %s1373_s2, 1024 }
  0x17   : > { %p1215_p13 = pnand %p1207_p11, %p869_p12  ;;  %s207_s13 = sshll.u32 %s1110_s12, 4  ;;  %s1219_s13 = int_to_ptr.vmem [resolvable:$true] %s207_s13 }
  0x18   : > { %p966_p0 = scmp.ne.s32.totalorder %s1373_s2, %s965_s16  ;;  %p972_p5 = scmp.lt.u32.totalorder %s965_s16, %s1373_s2 }
  0x19   : > { %p967_p1 = pneg %p1215_p13 }
  0x1b   : > { %p968_p2 = pnand %p967_p1, %p966_p0 }
  0x1d   : > { %p969_p3 = pneg %p968_p2 }
  0x1f   : > { %p974_p6 = pnand %p972_p5, %p969_p3 }
  0x21   : > { %977 = shalt.err (!%p974_p6)
}
  0x22   : > { %s978_s29 = scalar_lea.vmem %s195_s10, 1024  ;;  %p986_p8 = scmp.lt.s32.totalorder %s195_s10, %s195_s10 }
  0x23   : > { %p979_p7 = scmp.ne.s32.totalorder %s195_s10, %s978_s29  ;;  %p987_p4 = scmp.lt.s32.totalorder %s978_s29, %s978_s29 }
  0x25   : > { %p981_p9 = pnand %p979_p7, %p967_p1  ;;  %p988_p11 = por %p987_p4, %p986_p8 }
  0x27   : > { %p982_p12 = pneg %p981_p9 }
  0x29   : > { %p989_p10 = pnand %p988_p11, %p982_p12 }
  0x2b   : > { %992 = shalt.err (!%p989_p10)
}
  0x2c   : > { %s1111_s9 = smov 64   ;;  %s1112_s12 = smov 4  }
  0x2d   : > { %872 = dma.hbm_to_vmem [thread:$0]  (!%p1215_p13), %s1373_s2, 1024, %s195_s10, [#allocation5], %s1111_s9, %s1111_s9, %s1112_s12  }
  0x2e   : > { %s993_s24 = scalar_lea.hbm %s1374_s3, 1024 }
  0x2f   : > { %p994_p0 = scmp.ne.s32.totalorder %s1374_s3, %s993_s24  ;;  %p1000_p10 = scmp.lt.u32.totalorder %s993_s24, %s1374_s3 }
  0x31   : > { %p996_p4 = pnand %p994_p0, %p967_p1 }
  0x33   : > { %p997_p8 = pneg %p996_p4 }
  0x35   : > { %p1002_p11 = pnand %p1000_p10, %p997_p8 }
  0x37   : > { %1005 = shalt.err (!%p1002_p11)
}
  0x38   : > { %s1006_s10 = scalar_lea.vmem %s1219_s13, 1024  ;;  %p1014_p6 = scmp.lt.s32.totalorder %s1219_s13, %s1219_s13 }
  0x39   : > { %p1007_p2 = scmp.ne.s32.totalorder %s1219_s13, %s1006_s10  ;;  %p1015_p7 = scmp.lt.s32.totalorder %s1006_s10, %s1006_s10 }
  0x3b   : > { %p1009_p3 = pnand %p1007_p2, %p967_p1  ;;  %p1016_p9 = por %p1015_p7, %p1014_p6 }
  0x3d   : > { %p1010_p5 = pneg %p1009_p3 }
  0x3f   : > { %p1017_p12 = pnand %p1016_p9, %p1010_p5 }
  0x41   : > { %1020 = shalt.err (!%p1017_p12)
}
  0x42   : > { %875 = dma.hbm_to_vmem [thread:$0]  (!%p1215_p13), %s1374_s3, 1024, %s1219_s13, [#allocation8], %s1111_s9, %s1111_s9, %s1112_s12  }
  0x43   : > { %p1388_p0 = scmp.ne.s32.totalorder %s1385_s7, 0 }
  0x44   : > { %p1389_p4 = scmp.ne.s32.totalorder (!%p1388_p0), %s1386_s8, 0 }
  0x45   : > { %245 = sbr.rel (%p1388_p0) target bundleno = 1054 (0x41e), region = 40 }
  0x4c   : > { %1074 = dma.done.wait (%p1389_p4), [#allocation5], 1024  }
  0x4d   : > { %1076 = vsyncadd (%p1389_p4), [#allocation5], 4294966272 }
  0x4e   : > { %1078 = dma.done.wait (%p1389_p4), [#allocation8], 1024  }
  0x4f   : > { %1080 = vsyncadd (%p1389_p4), [#allocation8], 4294966272  ;;  %p284_p1 = scmp.lt.s32.totalorder %s1099_s21, 1  ;;  %v1113_v0 = vmov 0   ;;  %v1114_v1 = vmov 0.0   ;;  %v943_v3 = vld [vmem:[#allocation4] sm:$0xff]   ;;  %v310_v18 = vlaneseq }
  0x50   : > { %941 = vset.pattern.permute.xlu0 %v1113_v0  ;;  %814 = vmatprep.subr.bf16.mxu0 %v1114_v1  ;;  %302 = vst [vmem:[#allocation2] sm:$0x1] %v1114_v1  ;;  %vm1115_vm0 = vmmov 0   ;;  %v944_v4 = vld [vmem:[#allocation4 + $0x8] sm:$0xff]   ;;  %v945_v5 = vld [vmem:[#allocation4 + $0x10] sm:$0xff]   ;;  %v951_v6 = vld [vmem:[#allocation7] sm:$0xff]  }
  0x51   : > { %s1282_s7 = scalar_select %p284_p1, %s1099_s21, 1  ;;  %834 = vmatprep.subr.bf16.mxu1 %v1114_v1  ;;  %942 = vset.pattern.permute.xlu1 %v1113_v0  ;;  %v952_v7 = vld [vmem:[#allocation7 + $0x8] sm:$0xff]   ;;  %v946_v8 = vld [vmem:[#allocation4 + $0x18] sm:$0xff]   ;;  %v953_v9 = vld [vmem:[#allocation7 + $0x10] sm:$0xff]   ;;  %v311_v19 = vand.u32 127, %v310_v18  ;;  %vm614_vm3 = vcmask 57344  }
  0x52   : > { %830 = vmatprep.mubr.msk.bf16.mxu0 %vm1115_vm0, %v1114_v1  ;;  %850 = vmatprep.mubr.msk.bf16.mxu1 %vm1115_vm0, %v1114_v1  ;;  %v947_v10 = vld [vmem:[#allocation4 + $0x20] sm:$0xff]   ;;  %v954_v11 = vld [vmem:[#allocation7 + $0x18] sm:$0xff]   ;;  %v948_v12 = vld [vmem:[#allocation4 + $0x28] sm:$0xff]   ;;  %v1116_v21 = vmov 1.0|1.0   ;;  %vm303_vm5 = vcmask 0  }
  0x53   : > { %s768_s11 = sshll.u32 %s1282_s7, 3  ;;  %815 = vmatpush3.bf16.msra.mxu0 %v943_v3  ;;  %835 = vmatpush3.bf16.msra.mxu1 %v951_v6  ;;  %v955_v13 = vld [vmem:[#allocation7 + $0x20] sm:$0xff]   ;;  %v949_v14 = vld [vmem:[#allocation4 + $0x30] sm:$0xff]   ;;  %v956_v15 = vld [vmem:[#allocation7 + $0x28] sm:$0xff]   ;;  %s289_s16 = scalar_lea.vmem %s1371_s0, %s1282_s7  ;;  %304 = vst.msk [vmem:[#allocation3] sm:$0x1] %vm303_vm5, %v1114_v1 }
  0x54   : > { %s296_s9 = scalar_lea.vmem %s1372_s1, %s768_s11  ;;  %816 = vmatprep.subr.bf16.mxu0 %v1114_v1  ;;  %836 = vmatprep.subr.bf16.mxu1 %v1114_v1  ;;  %v950_v16 = vld [vmem:[#allocation4 + $0x38] sm:$0xff]   ;;  %v957_v17 = vld [vmem:[#allocation7 + $0x30] sm:$0xff]   ;;  %vm537_vm6 = vcmask 64512   ;;  %v633_v44 = vshrl.u32 %v310_v18, 7  ;;  %vm638_vm7 = vcmask 1040384   ;;  %s282_s25 = sand.u32 1, %s1091_s19  }
  0x55   : > { %v306_v2 = vld [vmem:[%s296_s9] sm:$0xff]  ;;  %s791_s27 = sshll.u32 %s1099_s21, 4  ;;  %s283_s29 = scalar_lea.vmem [#allocation9], %s282_s25 }
  0x56   : > { %313 = vperm.xlu0 %941, %v306_v2   ;;  %v958_v22 = vld [vmem:[#allocation7 + $0x38] sm:$0xff]   ;;  %v634_v48 = vsub.s32 0, %v633_v44  ;;  %s659_s10 = sshll.u32 %s283_s29, 4  ;;  %s1324_s7 = scalar_lea.hbm %s1376_s5, %s791_s27  ;;  %s1326_s10 = int_to_ptr.vmem [resolvable:$true] %s659_s10 }
  0x57   : > { %817 = vmatpush3.bf16.msra.mxu0 %v944_v4  ;;  %837 = vmatpush3.bf16.msra.mxu1 %v952_v7  ;;  %v305_v23 = vld [vmem:[%s289_s16] sm:$0x1]  ;;  %s647_s11 = scalar_lea.sflag [#allocation6], %s282_s25  ;;  %s1021_s13 = scalar_lea.vmem %s1326_s10, 16 }
  0x58   : > { %818 = vmatprep.subr.bf16.mxu0 %v1114_v1  ;;  %838 = vmatprep.subr.bf16.mxu1 %v1114_v1  ;;  %vm307_vm4 = vcmp.ne.s32.totalorder %v305_v23, 1  ;;  %v781_v36 = vld [vmem:[%s1375_s4] ss:$0 sm:$0xff]  ;;  %p1022_p13 = scmp.ne.s32.totalorder %s1326_s10, %s1021_s13  ;;  %p1390_p8 = scmp.ne.s32.totalorder %s1383_s28, 0 }
  0x59   : > { %v769_v24 = vsel %vm307_vm4, 1.0, %v1114_v1  ;;  %v536_v43 = vld [vmem:[#allocation2] sm:$0x1]  ;;  %s1117_s21 = smov [#allocation9]  }
  0x5a   : > { %v615_v25 = vsel %vm614_vm3, %v769_v24, 0.0  ;;  %v613_v32 = vld [vmem:[#allocation3] sm:$0x1]  ;;  %p1023_p10 = pnand %p1022_p13, %p1390_p8  ;;  %s1025_s8 = sshll.u32 %s1117_s21, 4  ;;  %s1026_s8 = int_to_ptr.vmem [resolvable:$false] %s1025_s8 }
  0x5b   : > { %819 = vmatpush3.bf16.msra.mxu0 %v945_v5  ;;  %839 = vmatpush3.bf16.msra.mxu1 %v953_v9  ;;  %s1027_s9 = scalar_lea.vmem %s1026_s8, 32  ;;  %p1028_p2 = scmp.lt.s32.totalorder %s1326_s10, %s1026_s8 }
  0x5c   : > { %820 = vmatprep.subr.bf16.mxu0 %v1114_v1  ;;  %840 = vmatprep.subr.bf16.mxu1 %v1114_v1  ;;  %p1024_p11 = pneg %p1023_p10  ;;  %p1029_p3 = scmp.lt.s32.totalorder %s1027_s9, %s1021_s13 }
  0x5e   : > { %p1030_p5 = por %p1029_p3, %p1028_p2 }
  0x5f   : > { %821 = vmatpush3.bf16.msra.mxu0 %v946_v8  ;;  %841 = vmatpush3.bf16.msra.mxu1 %v954_v11 }
  0x60   : > { %822 = vmatprep.subr.bf16.mxu0 %v1114_v1  ;;  %842 = vmatprep.subr.bf16.mxu1 %v1114_v1  ;;  %p1031_p6 = pnand %p1030_p5, %p1024_p11 }
  0x63   : > { %823 = vmatpush3.bf16.msra.mxu0 %v947_v10  ;;  %843 = vmatpush3.bf16.msra.mxu1 %v955_v13 }
  0x64   : > { %824 = vmatprep.subr.bf16.mxu0 %v1114_v1  ;;  %844 = vmatprep.subr.bf16.mxu1 %v1114_v1 }
  0x67   : > { %825 = vmatpush3.bf16.msra.mxu0 %v948_v12  ;;  %845 = vmatpush3.bf16.msra.mxu1 %v956_v15 }
  0x68   : > { %826 = vmatprep.subr.bf16.mxu0 %v1114_v1  ;;  %846 = vmatprep.subr.bf16.mxu1 %v1114_v1 }
  0x6b   : > { %827 = vmatpush3.bf16.msra.mxu0 %v949_v14  ;;  %847 = vmatpush3.bf16.msra.mxu1 %v957_v17 }
  0x6c   : > { %828 = vmatprep.subr.bf16.mxu0 %v1114_v1  ;;  %848 = vmatprep.subr.bf16.mxu1 %v1114_v1 }
  0x6f   : > { %829 = vmatpush3.bf16.msra.mxu0 %v950_v16  ;;  %849 = vmatpush3.bf16.msra.mxu1 %v958_v22 }
  0x70   : > { %854 = vmatprep.subr.mxu0 %v1114_v1 }
  0x75   : > { %616 = vadd.xlane.f32.xlu0 %v615_v25 }
  0xd5   : > { %v314_v20 = vpop.permute.xlu0 %313 }
  0xd6   : > { %vm315_vm1 = vcmp.eq.s32.totalorder %v314_v20, %v311_v19 }
  0xd7   : > { %vm779_vm2 = vmpackc.low %vm315_vm1, %vm315_vm1 }
  0xd8   : > { %831 = vmatmul.mubr.msk.bf16.vlgmr.msra.gmra.mrb[0].mxu0 %vm779_vm2, %v1116_v21 }
  0xd9   : > { %856 = vmatprep.mubr.msk.f32.mxu0 %vm1115_vm0, %v1114_v1 }
 0x102   : > { %v617_v31 = vpop.xlane.xlu0 %616 }
 0x103   : > { %v618_v33 = vadd.f32 %v617_v31, %v613_v32 }
 0x105   : > { %620 = vst.msk [vmem:[#allocation3] sm:$0x1] %vm303_vm5, %v618_v33 }
 0x10c   : > { %v624_v34 = vld [vmem:[#allocation3] sm:$0x1] }
 0x10d   : > { %959 = vrcp.f32 %v624_v34 }
 0x117   : > { %v960_v35 = vpop.eup %959 }
 0x118   : > { %629 = vperm.xlu1 %942, %v960_v35  }
 0x197   : > { %v630_v49 = vpop.permute.xlu1 %629 }
 0x198   : > { %v635_v50 = vrot.slane %v630_v49, %v634_v48 }
 0x1ab   : > { %v417_v26 = vpop.f32.mrb[0].mxu0 }
 0x1ac   : > { %v423_v27 = vpack.c.bf16 %v417_v26, %v417_v26  ;;  %v832_v28 = vpop.f32.mrb[1].mxu0 }
 0x1ad   : > { %v420_v29 = vpop.f32.mrb[2].mxu0 }
 0x1ae   : > { %v833_v30 = vpop.f32.mrb[3].mxu0  ;;  %851 = vmatmul.mubr.bf16.vlgmr.msra.gmra.mrb[0].mxu1 %v423_v27 }
 0x281   : > { %v529_v37 = vpop.f32.mrb[0].mxu1 }
 0x282   : > { %v530_v38 = vadd.f32 %v781_v36, %v529_v37  ;;  %v852_v39 = vpop.f32.mrb[1].mxu1 }
 0x283   : > { %v532_v40 = vpop.f32.mrb[2].mxu1 }
 0x284   : > { %961 = vtanh.f32 %v530_v38  ;;  %v853_v41 = vpop.f32.mrb[3].mxu1 }
 0x28e   : > { %v962_v42 = vpop.eup %961 }
 0x28f   : > { %855 = vmatpush3.msra.mxu0 %v962_v42 }
 0x290   : > { %857 = vmatmul.mubr.msk.f32.vlgmr.msra.gmra.mrb[4].mxu0 %vm537_vm6, %v769_v24 }
 0x363   : > { %v607_v45 = vpop.f32.mrb[4].mxu0 }
 0x364   : > { %v611_v46 = vadd.f32 %v607_v45, %v536_v43  ;;  %v858_v47 = vpop.f32.mrb[5].mxu0 }
 0x366   : > { %612 = vst [vmem:[#allocation2] sm:$0x1] %v611_v46 }
 0x36d   : > { %v626_v51 = vld [vmem:[#allocation2] sm:$0x1] }
 0x36e   : > { %v636_v52 = vmul.f32 %v635_v50, %v626_v51 }
 0x370   : > { %v637_v53 = vmul.f32 %v636_v52, %v636_v52 }
 0x372   : > { %v639_v54 = vsel %vm638_vm7, %v637_v53, 0.0 }
 0x373   : > { %640 = vadd.xlane.f32.xlu1 %v639_v54 }
 0x400   : > { %v641_v55 = vpop.xlane.xlu1 %640 }
 0x401   : > { %v642_v56 = vmax.f32 %v641_v55, 1e-24 }
 0x403   : > { %963 = vrsqrt.f32 %v642_v56 }
 0x40d   : > { %v964_v57 = vpop.eup %963 }
 0x40e   : > { %v644_v58 = vmul.f32 %v964_v57, %v636_v52 }
 0x410   : > { %645 = vst [vmem:[%s283_s29] sm:$0x1] %v644_v58 }
 0x411   : > { %1034 = shalt.err (!%p1031_p6)
}
 0x412   : > { %s1035_s12 = scalar_lea.hbm %s1324_s7, 16  ;;  %s1039_s17 = scalar_lea.hbm %s1376_s5, 32 }
 0x413   : > { %p1036_p7 = scmp.ne.s32.totalorder %s1324_s7, %s1035_s12  ;;  %p1040_p0 = scmp.lt.u32.totalorder %s1324_s7, %s1376_s5 }
 0x414   : > { %p1041_p4 = scmp.lt.u32.totalorder %s1039_s17, %s1035_s12  ;;  %p1043_p13 = scmp.lt.u32.totalorder %s1035_s12, %s1324_s7 }
 0x415   : > { %p1037_p9 = pnand %p1036_p7, %p1390_p8 }
 0x416   : > { %p1042_p1 = por %p1041_p4, %p1040_p0 }
 0x417   : > { %p1038_p12 = pneg %p1037_p9 }
 0x418   : > { %p1044_p10 = por %p1043_p13, %p1042_p1 }
 0x41a   : > { %p1045_p11 = pnand %p1044_p10, %p1038_p12 }
 0x41c   : > { %1048 = shalt.err (!%p1045_p11)
}
 0x41d   : > { %867 = dma.vmem_to_hbm [thread:$0]  (%p1390_p8), %s1326_s10, 16, %s1324_s7, %s647_s11  }
 0x41e PF: > { %p884_p2 = scmp.ge.s32.totalorder %s1107_s23, 2  ;;  %s671_s27 = sand.u32 1, %s1087_s18  }
 0x41f   : > { %p1391_p3 = scmp.ne.s32.totalorder %s1384_s30, 0  ;;  %s672_s29 = scalar_lea.sflag [#allocation6], %s671_s27 }
 0x421   : > { %p877_p5 = pnand %p884_p2, %p1391_p3 }
 0x423   : > { %1082 = dma.done.wait (!%p877_p5), %s672_s29, 16  }
 0x424   : > { %1084 = vsyncadd (!%p877_p5), %s672_s29, 4294967280  ;;  %s20_s23 = sadd.s32 1, %s1107_s23   ;;  %s1392_s28 = sld [smem:[#allocation13_spill]] }
 0x425   : > { %p17_p6 = scmp.ge.s32.totalorder %s20_s23, 4   ;;  %s1393_s18 = smov %s1091_s19 }
 0x426   : > { %s1394_s19 = smov %s1095_s20  ;;  %s1395_s20 = smov %s1201_s6 }
 0x427   : > { %s1396_s21 = smov %s1103_s22  ;;  %19 = sbr.rel (!%p17_p6) target bundleno = 6 (0x6), region = 95 }
 0x42a   : > { %s1397_s22 = smov %s1392_s28 }
 0x42e   :  { %676 = vsyncpa [#allocation5], 1 }
 0x42f   :  { %678 = vsyncpa [#allocation5 + $0x1], 1 }
 0x430   :  { %679 = vsyncpa [#allocation8], 1 }
 0x431   :  { %680 = vsyncpa [#allocation6], 1 }
 0x432   :  { %682 = vsyncpa [#allocation6 + $0x1], 1 }

</bundles_post_ra>
